<compile_context>
chip_gen: v7x
topology: tpu7x:2x2x1
jax: 0.10.0
libtpu: 0.0.40
codegen_flags: <defaults>
</compile_context>

<pallas_src>
import jax
import jax.numpy as jnp
from jax.experimental import pallas as pl
from jax.experimental.pallas import tpu as pltpu

HID1 = 20          # fc1 out_features
HID2 = 5           # fc2 out_features
LANES = 128        # lane width of the packed parameter slab
SLAB_ALIGN = 16    # bf16 sublane packing: keep every slab region 16-row aligned
H1_PAD = 32        # slab rows holding W2 (>= HID1, multiple of SLAB_ALIGN)
H2_PAD = 16        # slab rows holding W3 (>= HID2, multiple of SLAB_ALIGN)
MAX_TB = 1024      # max batch-tile rows


def _round_up(x, m):
    return (x + m - 1) // m * m


def _slab_layout(num_states):
    """Static row offsets of W1|b1|W2|b2|W3|b3 inside the packed bf16 slab."""
    in_pad = _round_up(num_states, 8)                    # x / W1 contraction rows
    r_w1 = 0
    r_b1 = r_w1 + _round_up(num_states, SLAB_ALIGN)
    r_w2 = r_b1 + SLAB_ALIGN
    r_b2 = r_w2 + H1_PAD
    r_w3 = r_b2 + SLAB_ALIGN
    r_b3 = r_w3 + H2_PAD
    rows = r_b3 + SLAB_ALIGN
    return in_pad, r_w1, r_b1, r_w2, r_b2, r_w3, r_b3, rows


def pack_params(params, num_states, num_actions):
    """Pack W1|b1|W2|b2|W3|b3 (zero padded) into one bf16 [rows, 128] slab.

    Weights are stored transposed ([in_features, out_features]) so every layer
    is `x @ W + b`, matching PyTorch's `x @ weight.T + bias`.  All padding is
    zero, so padded lanes stay exactly 0 through the ReLUs.
    """
    assert HID1 <= min(H1_PAD, LANES) and HID2 <= min(H2_PAD, LANES)
    assert num_actions <= LANES
    _, r_w1, r_b1, r_w2, r_b2, r_w3, r_b3, rows = _slab_layout(num_states)
    slab = jnp.zeros((rows, LANES), jnp.float32)
    slab = slab.at[r_w1:r_w1 + num_states, :HID1].set(params["w1"])
    slab = slab.at[r_b1:r_b1 + 1, :HID1].set(params["b1"])
    slab = slab.at[r_w2:r_w2 + HID1, :HID2].set(params["w2"])
    slab = slab.at[r_b2:r_b2 + 1, :HID2].set(params["b2"])
    slab = slab.at[r_w3:r_w3 + HID2, :num_actions].set(params["w3"])
    slab = slab.at[r_b3:r_b3 + 1, :num_actions].set(params["b3"])
    return slab.astype(jnp.bfloat16)


def _make_kernel(num_states, out_pad):
    in_pad, r_w1, r_b1, r_w2, r_b2, r_w3, r_b3, _ = _slab_layout(num_states)

    def kernel(x_ref, p_ref, out_ref):
        f32, bf16 = jnp.float32, jnp.bfloat16
        x = x_ref[...].astype(bf16)                       # [TB, in_pad]
        w1 = p_ref[r_w1:r_w1 + in_pad, :]                 # [in_pad, 128] bf16
        b1 = p_ref[r_b1:r_b1 + 1, :].astype(f32)          # [1, 128]
        w2 = p_ref[r_w2:r_w2 + H1_PAD, :]                 # [32, 128]
        b2 = p_ref[r_b2:r_b2 + 1, :].astype(f32)
        w3 = p_ref[r_w3:r_w3 + H2_PAD, :]                 # [16, 128]
        b3 = p_ref[r_b3:r_b3 + 1, :].astype(f32)

        # fc1 + ReLU.  Padded w1/b1 columns are 0 -> h1[:, HID1:] stays 0.
        h1 = jnp.maximum(jnp.dot(x, w1, preferred_element_type=f32) + b1, 0.0)
        # fc2 + ReLU.  Contract only the H1_PAD lanes that back w2's rows.
        h2 = jnp.maximum(
            jnp.dot(h1[:, :H1_PAD].astype(bf16), w2,
                    preferred_element_type=f32) + b2, 0.0)
        # Output layer (no activation).
        y = jnp.dot(h2[:, :H2_PAD].astype(bf16), w3,
                    preferred_element_type=f32) + b3
        # Narrow store: only the out_pad lanes carrying real Q-values.
        out_ref[...] = y[:, :out_pad].astype(out_ref.dtype)

    return kernel


def _choose_tiling(batch):
    """Pick (tile_rows, padded_batch): <=10% padding, prefer an even grid (v7x)."""
    batch8 = _round_up(batch, 8)
    cands = []
    if batch8 <= MAX_TB:
        cands.append((batch8, batch8))               # single tile, <=7 padded rows
    for tb in (1024, 512, 256, 128, 64):
        bp = _round_up(batch, tb)
        if (bp - batch) * 10 <= batch:               # <=10% padded rows
            cands.append((tb, bp))
    if not cands:                                    # fallback: 64-row tiles
        cands.append((64, _round_up(batch, 64)))

    def score(cand):
        tb, bp = cand
        steps = bp // tb
        # even step count balances v7x's 2 TCs; then fewer steps; then less padding
        return (steps % 2, steps, bp)

    return min(cands, key=score)


def dqn_forward(x, slab, num_actions):
    """x: [batch, num_states] float32; slab: packed params from pack_params."""
    batch, num_states = x.shape
    in_pad, *_, rows = _slab_layout(num_states)
    out_pad = _round_up(num_actions, 8)
    assert slab.shape == (rows, LANES), (slab.shape, rows)

    tb, batch_pad = _choose_tiling(batch)

    x_in = x
    if batch_pad != batch or in_pad != num_states:
        x_in = jnp.pad(x, ((0, batch_pad - batch), (0, in_pad - num_states)))

    out = pl.pallas_call(
        _make_kernel(num_states, out_pad),
        out_shape=jax.ShapeDtypeStruct((batch_pad, out_pad), jnp.float32),
        grid=(batch_pad // tb,),
        in_specs=[
            pl.BlockSpec((tb, in_pad), lambda i: (i, 0)),    # activations: batch-tiled
            pl.BlockSpec((rows, LANES), lambda i: (0, 0)),   # params: fetched once, VMEM-resident
        ],
        out_specs=pl.BlockSpec((tb, out_pad), lambda i: (i, 0)),  # narrow store
        compiler_params=pltpu.CompilerParams(
            dimension_semantics=("parallel",)),              # shard batch over v7x's 2 TCs
    )(x_in, slab)

    if batch_pad != batch or out_pad != num_actions:
        out = out[:batch, :num_actions]
    return out


def init_dqn_params(key, num_states, num_actions):
    """PyTorch nn.Linear-style init U(-1/sqrt(fan_in), 1/sqrt(fan_in)).
    Weights stored transposed: [in_features, out_features]; biases [1, out]."""
    dims = [(num_states, HID1), (HID1, HID2), (HID2, num_actions)]
    params = {}
    for i, (fan_in, fan_out) in enumerate(dims, start=1):
        key, kw, kb = jax.random.split(key, 3)
        bound = 1.0 / (fan_in ** 0.5)
        params[f"w{i}"] = jax.random.uniform(
            kw, (fan_in, fan_out), jnp.float32, minval=-bound, maxval=bound)
        params[f"b{i}"] = jax.random.uniform(
            kb, (1, fan_out), jnp.float32, minval=-bound, maxval=bound)
    return params


if __name__ == "__main__":
    num_states = 16
    num_actions = 4

    key = jax.random.PRNGKey(0)
    key, kp = jax.random.split(key)
    params = init_dqn_params(kp, num_states, num_actions)
    slab = pack_params(params, num_states, num_actions)

    def ref_fn(x):
        h1 = jnp.maximum(x @ params["w1"] + params["b1"], 0.0)
        h2 = jnp.maximum(h1 @ params["w2"] + params["b2"], 0.0)
        return h2 @ params["w3"] + params["b3"]

    # batch=8: per-step acting path (single small tile, grid=1).
    # batch=2050: gridded replay/eval path (padding + multi-tile grid + slice).
    for batch in (8, 2050):
        key, kb = jax.random.split(key)
        x = jax.random.normal(kb, (batch, num_states), jnp.float32)
        out = dqn_forward(x, slab, num_actions)
        jax.block_until_ready(out)
        ref = ref_fn(x)
        assert out.shape == (batch, num_actions)
        # bf16 MXU operands with f32 accumulation vs. pure-f32 reference.
        assert jnp.allclose(out, ref, atol=3e-2, rtol=3e-2), \
            float(jnp.max(jnp.abs(out - ref)))

    print("KERNEL_OK")
</pallas_src>

<mosaic_0001>
module attributes {stable_mosaic.version = 11 : i64} {
  func.func @kernel(%arg0: i32, %arg1: memref<8x16xf32, #tpu.memory_space<vmem>>, %arg2: memref<112x128xbf16, #tpu.memory_space<vmem>>, %arg3: memref<8x8xf32, #tpu.memory_space<vmem>>) attributes {dimension_semantics = [#tpu.dimension_semantics<parallel>], iteration_bounds = array<i64: 1>, scalar_prefetch = 0 : i64, scratch_operands = 0 : i64, tpu.core_type = #tpu.core_type<tc>, window_params = [{transform_indices = @transform_0, window_bounds = array<i64: 8, 16>}, {pipeline_mode = #tpu.pipeline_mode<synchronous>, transform_indices = @transform_1, window_bounds = array<i64: 112, 128>}, {transform_indices = @transform_2, window_bounds = array<i64: 8, 8>}]} {
    %c0 = arith.constant 0 : index
    %c0_0 = arith.constant 0 : index
    %0 = vector.load %arg1[%c0, %c0_0] : memref<8x16xf32, #tpu.memory_space<vmem>>, vector<8x16xf32>
    %1 = arith.truncf %0 : vector<8x16xf32> to vector<8x16xbf16>
    %c0_1 = arith.constant 0 : index
    %c0_2 = arith.constant 0 : index
    %2 = vector.load %arg2[%c0_1, %c0_2] : memref<112x128xbf16, #tpu.memory_space<vmem>>, vector<16x128xbf16>
    %c16 = arith.constant 16 : index
    %c0_3 = arith.constant 0 : index
    %3 = vector.load %arg2[%c16, %c0_3] : memref<112x128xbf16, #tpu.memory_space<vmem>>, vector<1x128xbf16>
    %4 = arith.extf %3 : vector<1x128xbf16> to vector<1x128xf32>
    %c32 = arith.constant 32 : index
    %c0_4 = arith.constant 0 : index
    %5 = vector.load %arg2[%c32, %c0_4] : memref<112x128xbf16, #tpu.memory_space<vmem>>, vector<32x128xbf16>
    %c64 = arith.constant 64 : index
    %c0_5 = arith.constant 0 : index
    %6 = vector.load %arg2[%c64, %c0_5] : memref<112x128xbf16, #tpu.memory_space<vmem>>, vector<1x128xbf16>
    %7 = arith.extf %6 : vector<1x128xbf16> to vector<1x128xf32>
    %c80 = arith.constant 80 : index
    %c0_6 = arith.constant 0 : index
    %8 = vector.load %arg2[%c80, %c0_6] : memref<112x128xbf16, #tpu.memory_space<vmem>>, vector<16x128xbf16>
    %c96 = arith.constant 96 : index
    %c0_7 = arith.constant 0 : index
    %9 = vector.load %arg2[%c96, %c0_7] : memref<112x128xbf16, #tpu.memory_space<vmem>>, vector<1x128xbf16>
    %10 = arith.extf %9 : vector<1x128xbf16> to vector<1x128xf32>
    %cst = arith.constant dense<0.000000e+00> : vector<8x128xf32>
    %11 = tpu.matmul %1, %2, %cst {dimension_numbers = #tpu.dot_dimension_numbers<[1], [0], [0], [1], [0, 0, 1, 1], [], []>} : vector<8x16xbf16>, vector<16x128xbf16>, vector<8x128xf32> -> vector<8x128xf32>
    %12 = vector.broadcast %4 : vector<1x128xf32> to vector<8x128xf32>
    %13 = arith.addf %11, %12 : vector<8x128xf32>
    %cst_8 = arith.constant 0.000000e+00 : f32
    %14 = vector.broadcast %cst_8 : f32 to vector<8x128xf32>
    %15 = arith.maximumf %13, %14 : vector<8x128xf32>
    %16 = vector.extract_strided_slice %15 {offsets = [0, 0], sizes = [8, 32], strides = [1, 1]} : vector<8x128xf32> to vector<8x32xf32>
    %17 = arith.truncf %16 : vector<8x32xf32> to vector<8x32xbf16>
    %cst_9 = arith.constant dense<0.000000e+00> : vector<8x128xf32>
    %18 = tpu.matmul %17, %5, %cst_9 {dimension_numbers = #tpu.dot_dimension_numbers<[1], [0], [0], [1], [0, 0, 1, 1], [], []>} : vector<8x32xbf16>, vector<32x128xbf16>, vector<8x128xf32> -> vector<8x128xf32>
    %19 = vector.broadcast %7 : vector<1x128xf32> to vector<8x128xf32>
    %20 = arith.addf %18, %19 : vector<8x128xf32>
    %cst_10 = arith.constant 0.000000e+00 : f32
    %21 = vector.broadcast %cst_10 : f32 to vector<8x128xf32>
    %22 = arith.maximumf %20, %21 : vector<8x128xf32>
    %23 = vector.extract_strided_slice %22 {offsets = [0, 0], sizes = [8, 16], strides = [1, 1]} : vector<8x128xf32> to vector<8x16xf32>
    %24 = arith.truncf %23 : vector<8x16xf32> to vector<8x16xbf16>
    %cst_11 = arith.constant dense<0.000000e+00> : vector<8x128xf32>
    %25 = tpu.matmul %24, %8, %cst_11 {dimension_numbers = #tpu.dot_dimension_numbers<[1], [0], [0], [1], [0, 0, 1, 1], [], []>} : vector<8x16xbf16>, vector<16x128xbf16>, vector<8x128xf32> -> vector<8x128xf32>
    %26 = vector.broadcast %10 : vector<1x128xf32> to vector<8x128xf32>
    %27 = arith.addf %25, %26 : vector<8x128xf32>
    %28 = vector.extract_strided_slice %27 {offsets = [0, 0], sizes = [8, 8], strides = [1, 1]} : vector<8x128xf32> to vector<8x8xf32>
    %c0_12 = arith.constant 0 : index
    %c0_13 = arith.constant 0 : index
    %29 = vector.load %arg3[%c0_12, %c0_13] : memref<8x8xf32, #tpu.memory_space<vmem>>, vector<8x8xf32>
    tpu.vector_store %arg3[%c0_12, %c0_13], %28 {strides = array<i32>} : memref<8x8xf32, #tpu.memory_space<vmem>>, vector<8x8xf32>,
    return
  }
  func.func @transform_0(%arg0: i32) -> (i32, i32) {
    %c0_i32 = arith.constant 0 : i32
    %c0_i32_0 = arith.constant 0 : i32
    return %arg0, %c0_i32 : i32, i32
  }
  func.func @transform_1(%arg0: i32) -> (i32, i32) {
    %c0_i32 = arith.constant 0 : i32
    %c0_i32_0 = arith.constant 0 : i32
    %c0_i32_1 = arith.constant 0 : i32
    return %c0_i32, %c0_i32_0 : i32, i32
  }
  func.func @transform_2(%arg0: i32) -> (i32, i32) {
    %c0_i32 = arith.constant 0 : i32
    %c0_i32_0 = arith.constant 0 : i32
    return %arg0, %c0_i32 : i32, i32
  }
}

</mosaic_0001>

<bundles_post_ra>
// kernel: tpu_custom_call.1
= control target key start
LH: loop header
LB: loop body
LE: loop exit
PB: predicated region body
PF: predicated region fallthrough
CT: control target
= control target key end

     0   :  { %7 = vsyncpa [#allocation3], 0  ;;  %s428_s0 = inlined_call_operand.hbm [shape: f32[8,16], index: 0, kind: input, shape index: {}]   ;;  %s429_s1 = inlined_call_operand.hbm [shape: bf16[112,128], index: 1, kind: input, shape index: {}]   ;;  %s430_s2 = inlined_call_operand.hbm [shape: f32[8,8], index: 2, kind: output, shape index: {}]  }
   0x1   :  { %8 = vsyncpa [#allocation6], 0 }
   0x2   :  { %9 = vsyncpa [#allocation4], 0  ;;  %s361_s9 = smov [#allocation2]   ;;  %s362_s11 = smov [#allocation5]  }
   0x3   :  { %s16_s10 = sshll.u32 %s361_s9, 4  ;;  %s25_s12 = sshll.u32 %s362_s11, 4  ;;  %s17_s10 = int_to_ptr.vmem [resolvable:$true] %s16_s10  ;;  %s383_s12 = int_to_ptr.vmem [resolvable:$true] %s25_s12 }
   0x4   :  { %s289_s15 = scalar_lea.hbm %s428_s0, 128 }
   0x5   :  { %p290_p0 = scmp.ne.s32.totalorder %s428_s0, %s289_s15  ;;  %p293_p1 = scmp.lt.u32.totalorder %s289_s15, %s428_s0 }
   0x7   :  { %p295_p2 = pnand %p293_p1, %p290_p0 }
   0x9   :  { %298 = shalt.err (!%p295_p2)
}
   0xa   :  { %s299_s20 = scalar_lea.vmem %s17_s10, 128  ;;  %p304_p4 = scmp.lt.s32.totalorder %s17_s10, %s17_s10 }
   0xb   :  { %p300_p3 = scmp.ne.s32.totalorder %s17_s10, %s299_s20  ;;  %p305_p5 = scmp.lt.s32.totalorder %s299_s20, %s299_s20 }
   0xd   :  { %p306_p6 = por %p305_p5, %p304_p4 }
   0xf   :  { %p307_p7 = pnand %p306_p6, %p300_p3 }
  0x11   :  { %310 = shalt.err (!%p307_p7)
}
  0x12   :  { %19 = dma.hbm_to_vmem [thread:$0]  %s428_s0, 128, %s17_s10, [#allocation3]  }
  0x13   :  { %s311_s25 = scalar_lea.hbm %s429_s1, 896 }
  0x14   :  { %p312_p8 = scmp.ne.s32.totalorder %s429_s1, %s311_s25  ;;  %p315_p9 = scmp.lt.u32.totalorder %s311_s25, %s429_s1 }
  0x16   :  { %p317_p10 = pnand %p315_p9, %p312_p8 }
  0x18   :  { %320 = shalt.err (!%p317_p10)
}
  0x19   :  { %s321_s30 = scalar_lea.vmem %s383_s12, 896  ;;  %p326_p12 = scmp.lt.s32.totalorder %s383_s12, %s383_s12 }
  0x1a   :  { %p322_p11 = scmp.ne.s32.totalorder %s383_s12, %s321_s30  ;;  %p327_p13 = scmp.lt.s32.totalorder %s321_s30, %s321_s30 }
  0x1c   :  { %p328_p0 = por %p327_p13, %p326_p12 }
  0x1e   :  { %p329_p1 = pnand %p328_p0, %p322_p11 }
  0x20   :  { %332 = shalt.err (!%p329_p1)
}
  0x21   :  { %s363_s0 = smov 64   ;;  %s364_s3 = smov 4  }
  0x22   :  { %31 = dma.hbm_to_vmem [thread:$0]  %s429_s1, 896, %s383_s12, [#allocation6], %s363_s0, %s363_s0, %s364_s3  }
  0x23   :  { %355 = dma.done.wait [#allocation3], 128  }
  0x24   :  { %356 = vsyncadd [#allocation3], 4294967168 }
  0x25   :  { %357 = dma.done.wait [#allocation6], 896  }
  0x26   :  { %358 = vsyncadd [#allocation6], 4294966400  ;;  %v365_v0 = vmov 0.0   ;;  %vm366_vm0 = vmmov 0   ;;  %v285_v1 = vld [vmem:[#allocation5] sm:$0xff]   ;;  %v39_v2 = vld [vmem:[#allocation2] sm:$0xff]  ;;  %v55_v7 = vlaneseq }
  0x27   :  { %258 = vmatprep.subr.bf16.mxu0 %v365_v0  ;;  %260 = vmatprep.mubr.msk.bf16.mxu0 %vm366_vm0, %v365_v0  ;;  %vm65_vm1 = vcmask 130048   ;;  %v40_v3 = vpack.c.bf16 %v39_v2, %v39_v2  ;;  %v286_v4 = vld [vmem:[#allocation5 + $0x10] sm:$0xff]   ;;  %v287_v5 = vld [vmem:[#allocation5 + $0x18] sm:$0xff]   ;;  %v288_v6 = vld [vmem:[#allocation5 + $0x28] sm:$0xff]   ;;  %vm127_vm2 = vcmask 261120   ;;  %s367_s1 = smov [#allocation7]  }
  0x28   :  { %264 = vmatprep.subr.bf16.mxu1 %v365_v0  ;;  %268 = vmatprep.mubr.msk.bf16.mxu1 %vm366_vm0, %v365_v0  ;;  %v56_v8 = vshrl.u32 %v55_v7, 7  ;;  %v43_v9 = vld [vmem:[#allocation5 + $0x8] sm:$0x1]  ;;  %v49_v20 = vld [vmem:[#allocation5 + $0x20] sm:$0x1]  ;;  %s234_s6 = sshll.u32 %s367_s1, 4  ;;  %s235_s6 = int_to_ptr.vmem [resolvable:$true] %s234_s6 }
  0x29   :  { %259 = vmatpush3.bf16.msra.mxu0 %v285_v1  ;;  %265 = vmatpush3.bf16.msra.mxu1 %v286_v4  ;;  %v44_v10 = vunpack.c.l.bf16 %v43_v9  ;;  %v50_v21 = vunpack.c.l.bf16 %v49_v20  ;;  %v53_v30 = vld [vmem:[#allocation5 + $0x30] sm:$0x1]  ;;  %vm226_vm3 = vcmask 64512   ;;  %s333_s7 = scalar_lea.vmem %s235_s6, 128  ;;  %p338_p3 = scmp.lt.s32.totalorder %s235_s6, %s235_s6 }
  0x2a   :  { %272 = vmatprep.subr.bf16.mxu0 %v365_v0  ;;  %266 = vmatprep.subr.bf16.mxu1 %v365_v0  ;;  %v57_v11 = vsub.s32 0, %v56_v8  ;;  %v54_v31 = vunpack.c.l.bf16 %v53_v30  ;;  %p334_p2 = scmp.ne.s32.totalorder %s235_s6, %s333_s7  ;;  %p339_p4 = scmp.lt.s32.totalorder %s333_s7, %s333_s7 }
  0x2c   :  { %261 = vmatmul.mubr.msk.bf16.vlgmr.msra.gmra.mrb[0].mxu0 %vm65_vm1, %v40_v3  ;;  %v58_v12 = vrot.slane %v44_v10, %v57_v11  ;;  %v114_v22 = vrot.slane %v50_v21, %v57_v11  ;;  %v176_v32 = vrot.slane %v54_v31, %v57_v11  ;;  %p340_p5 = por %p339_p4, %p338_p3 }
  0x2d   :  { %274 = vmatprep.mubr.msk.bf16.mxu0 %vm366_vm0, %v365_v0  ;;  %267 = vmatpush3.bf16.msra.mxu1 %v287_v5 }
  0x2e   :  { %273 = vmatpush3.bf16.msra.mxu0 %v288_v6  ;;  %p341_p6 = pnand %p340_p5, %p334_p2 }
  0xff   :  { %v103_v13 = vpop.f32.mrb[0].mxu0 }
 0x100   :  { %v104_v14 = vadd.f32 %v103_v13, %v58_v12  ;;  %v262_v15 = vpop.f32.mrb[1].mxu0 }
 0x101   :  { %v106_v16 = vpop.f32.mrb[2].mxu0 }
 0x102   :  { %v109_v17 = vmax.f32 %v104_v14, 0.0  ;;  %v263_v18 = vpop.f32.mrb[3].mxu0 }
 0x104   :  { %v110_v19 = vpack.c.bf16 %v109_v17, %v109_v17 }
 0x106   :  { %269 = vmatmul.mubr.msk.bf16.vlgmr.msra.gmra.mrb[0].mxu1 %vm127_vm2, %v110_v19 }
 0x1d9   :  { %v165_v23 = vpop.f32.mrb[0].mxu1 }
 0x1da   :  { %v166_v24 = vadd.f32 %v165_v23, %v114_v22  ;;  %v270_v25 = vpop.f32.mrb[1].mxu1 }
 0x1db   :  { %v168_v26 = vpop.f32.mrb[2].mxu1 }
 0x1dc   :  { %v171_v27 = vmax.f32 %v166_v24, 0.0  ;;  %v271_v28 = vpop.f32.mrb[3].mxu1 }
 0x1de   :  { %v172_v29 = vpack.c.bf16 %v171_v27, %v171_v27 }
 0x1e0   :  { %275 = vmatmul.mubr.msk.bf16.vlgmr.msra.gmra.mrb[4].mxu0 %vm65_vm1, %v172_v29 }
 0x2b3   :  { %v220_v33 = vpop.f32.mrb[4].mxu0 }
 0x2b4   :  { %v221_v34 = vadd.f32 %v220_v33, %v176_v32  ;;  %v276_v35 = vpop.f32.mrb[5].mxu0 }
 0x2b5   :  { %v223_v36 = vpop.f32.mrb[6].mxu0 }
 0x2b6   :  { %v277_v37 = vpop.f32.mrb[7].mxu0  ;;  %227 = vst.msk [vmem:[#allocation7] sm:$0xff] %vm226_vm3, %v221_v34 }
 0x2b7   :  { %344 = shalt.err (!%p341_p6)
}
 0x2b8   :  { %s345_s10 = scalar_lea.hbm %s430_s2, 128 }
 0x2b9   :  { %p346_p7 = scmp.ne.s32.totalorder %s430_s2, %s345_s10  ;;  %p349_p8 = scmp.lt.u32.totalorder %s345_s10, %s430_s2 }
 0x2bb   :  { %p351_p9 = pnand %p349_p8, %p346_p7 }
 0x2bd   :  { %354 = shalt.err (!%p351_p9)
}
 0x2be   :  { %237 = dma.vmem_to_hbm [thread:$0]  %s235_s6, 128, %s430_s2, [#allocation4]  }
 0x2bf   :  { %359 = dma.done.wait [#allocation4], 128  }
 0x2c0   :  { %360 = vsyncadd [#allocation4], 4294967168 }
 0x2c1   :  { %241 = vsyncpa [#allocation3], 1 }
 0x2c2   :  { %242 = vsyncpa [#allocation6], 1 }
 0x2c3   :  { %243 = vsyncpa [#allocation4], 1 }

</bundles_post_ra>
